<compile_context>
chip_gen: v6e
topology: v6e:2x2x1
jax: 0.10.0
libtpu: 0.0.40
codegen_flags: <defaults>
</compile_context>

<pallas_src>
import jax
import jax.numpy as jnp
from jax.experimental import pallas as pl
from jax.experimental.pallas import tpu as pltpu


def _round_up(x, m):
    return (x + m - 1) // m * m


def _choose_tile(n, block_rows):
    # Small batches: one full-extent tile (no padding, no (8,128) issues).
    if n < 256:
        return n
    # Large batches: 128-aligned tiles, >= 2 grid steps (v7x has 2 TCs),
    # capped at block_rows to bound VMEM.
    tb = _round_up(-(-n // 2), 128)
    return max(128, min(tb, _round_up(block_rows, 128)))


def critic_kernel(state_ref, action_ref,
                  ws1_ref, bs1_ref,
                  wa1_ref, ba1_ref,
                  ws2_ref, bs2_ref,
                  w2_ref, b2_ref,
                  w3_ref, b3_ref,
                  out_ref):
    f32, bf16 = jnp.float32, jnp.bfloat16

    st = state_ref[...].astype(bf16)                   # [tb, sd]
    ac = action_ref[...].astype(bf16)                  # [tb, ad]

    # s1 = relu(state @ Ws1 + bs1)                     -> [tb, 256]
    s1 = jnp.dot(st, ws1_ref[...], preferred_element_type=f32) + bs1_ref[...]
    s1 = jnp.maximum(s1, 0.0)

    # a1 = relu(action @ Wa1 + ba1)                    -> [tb, 128]
    a1 = jnp.dot(ac, wa1_ref[...], preferred_element_type=f32) + ba1_ref[...]
    a1 = jnp.maximum(a1, 0.0)

    # s2 = relu(s1 @ Ws2 + bs2)                        -> [tb, 128]
    s2 = jnp.dot(s1.astype(bf16), ws2_ref[...],
                 preferred_element_type=f32) + bs2_ref[...]
    s2 = jnp.maximum(s2, 0.0)

    # x = relu(cat(s2, a1) @ W2 + b2): one K=256 matmul (lane-dim concat of
    # two 128-wide blocks is layout-free; fills the 256-deep MXU on v6e/v7x).
    xin = jnp.concatenate([s2.astype(bf16), a1.astype(bf16)], axis=-1)  # [tb,256]
    x = jnp.dot(xin, w2_ref[...], preferred_element_type=f32) + b2_ref[...]
    x = jnp.maximum(x, 0.0)                            # [tb, 128]

    # q = x @ W3 + b3 (N=1): VPU multiply + XLU lane reduce instead of a
    # 1-column matmul; emitted lane-dense as a [1, tb] row.
    q = jnp.sum(x * w3_ref[...], axis=-1)              # [tb]
    out_ref[...] = (q[None, :] + b3_ref[...]).astype(out_ref.dtype)   # [1, tb]


def pack_params(params):
    """Pre-pack weights: [in, out] layout, matmul weights in bf16, biases and
    the final (VPU-path) fc3 row in f32."""
    bf16 = jnp.bfloat16
    return {
        "ws1": params["ws1"].astype(bf16),        # [sd, 256]
        "bs1": params["bs1"],                     # [1, 256]
        "wa1": params["wa1"].astype(bf16),        # [ad, 128]
        "ba1": params["ba1"],                     # [1, 128]
        "ws2": params["ws2"].astype(bf16),        # [256, 128]
        "bs2": params["bs2"],                     # [1, 128]
        "w2":  params["w2"].astype(bf16),         # [256, 128]
        "b2":  params["b2"],                      # [1, 128]
        "w3_row": params["w3"].reshape(1, 128),   # f32 (VPU path)
        "b3":  params["b3"],                      # [1, 1]
    }


def critic_forward(state, action, packed, *, block_rows=1024):
    n, sd = state.shape
    ad = action.shape[1]
    tb = _choose_tile(n, block_rows)
    num_tiles = -(-n // tb)

    weights = (packed["ws1"], packed["bs1"],
               packed["wa1"], packed["ba1"],
               packed["ws2"], packed["bs2"],
               packed["w2"], packed["b2"],
               packed["w3_row"], packed["b3"])

    # Batch-tiled inputs (state/action accepted in f32 or bf16 as-is);
    # weights/biases use constant index_maps -> DMA'd once, VMEM-resident.
    in_specs = [pl.BlockSpec((tb, sd), lambda i: (i, 0)),
                pl.BlockSpec((tb, ad), lambda i: (i, 0))]
    in_specs += [pl.BlockSpec(w.shape, lambda i: (0, 0)) for w in weights]
    out_spec = pl.BlockSpec((1, tb), lambda i: (0, i))   # lane-dense output row

    weight_bytes = sum(int(w.size) * w.dtype.itemsize for w in weights)
    flops = 2 * n * (sd * 256 + ad * 128 + 256 * 128 + 256 * 128 + 128)
    bytes_accessed = (n * (sd * state.dtype.itemsize + ad * action.dtype.itemsize)
                      + n * 4 + weight_bytes)

    q_row = pl.pallas_call(
        critic_kernel,
        out_shape=jax.ShapeDtypeStruct((1, n), jnp.float32),
        grid=(num_tiles,),
        in_specs=in_specs,
        out_specs=out_spec,
        compiler_params=pltpu.CompilerParams(
            dimension_semantics=("parallel",),
            vmem_limit_bytes=32 * 1024 * 1024),
        cost_estimate=pl.CostEstimate(flops=flops, transcendentals=0,
                                      bytes_accessed=bytes_accessed),
    )(state, action, *weights)
    return q_row.reshape(n, 1)


def init_params(key, state_dim, action_dim):
    """Deterministic init mimicking the PyTorch module's init scheme."""
    ks = jax.random.split(key, 10)
    EPS = 0.003

    def u(k, shape, bound):
        return jax.random.uniform(k, shape, jnp.float32, -bound, bound)

    p = {}
    p["ws1"] = u(ks[0], (state_dim, 256), 1.0 / jnp.sqrt(state_dim))
    p["bs1"] = u(ks[1], (1, 256), 1.0 / jnp.sqrt(state_dim))
    p["ws2"] = u(ks[2], (256, 128), 1.0 / jnp.sqrt(256.0))
    p["bs2"] = u(ks[3], (1, 128), 1.0 / jnp.sqrt(256.0))
    p["wa1"] = u(ks[4], (action_dim, 128), 1.0 / jnp.sqrt(action_dim))
    p["ba1"] = u(ks[5], (1, 128), 1.0 / jnp.sqrt(action_dim))
    p["w2"] = u(ks[6], (256, 128), 1.0 / jnp.sqrt(256.0))
    p["b2"] = u(ks[7], (1, 128), 1.0 / jnp.sqrt(256.0))
    p["w3"] = u(ks[8], (128, 1), EPS)
    p["b3"] = u(ks[9], (1, 1), 1.0 / jnp.sqrt(128.0))
    return p


def critic_ref(state, action, p):
    """Pure-JAX f32 reference for correctness checking."""
    s1 = jax.nn.relu(state @ p["ws1"] + p["bs1"])
    s2 = jax.nn.relu(s1 @ p["ws2"] + p["bs2"])
    a1 = jax.nn.relu(action @ p["wa1"] + p["ba1"])
    x = jnp.concatenate([s2, a1], axis=1)
    x = jax.nn.relu(x @ p["w2"] + p["b2"])
    return x @ p["w3"] + p["b3"]


if __name__ == "__main__":
    key = jax.random.PRNGKey(0)
    k_param, k_state, k_action = jax.random.split(key, 3)

    batch = 8
    state_dim = 32
    action_dim = 8

    params = init_params(k_param, state_dim, action_dim)
    packed = pack_params(params)

    state = jax.random.normal(k_state, (batch, state_dim), jnp.float32)
    action = jax.random.normal(k_action, (batch, action_dim), jnp.float32)

    q = jax.block_until_ready(critic_forward(state, action, packed))
    q_ref = critic_ref(state, action, params)
    assert q.shape == (batch, 1)
    # bf16 matmul inputs (f32 accumulation) -> slightly loosened tolerance.
    assert jnp.allclose(q, q_ref, atol=2e-2, rtol=2e-2), (
        f"max abs err {float(jnp.max(jnp.abs(q - q_ref)))}")

    # Second check: batch >= 256 and not a multiple of the tile -> exercises
    # the multi-step "parallel" grid and boundary-block masking.
    k_s2, k_a2 = jax.random.split(k_state)
    state2 = jax.random.normal(k_s2, (300, state_dim), jnp.float32)
    action2 = jax.random.normal(k_a2, (300, action_dim), jnp.float32)
    q2 = jax.block_until_ready(critic_forward(state2, action2, packed))
    q2_ref = critic_ref(state2, action2, params)
    assert q2.shape == (300, 1)
    assert jnp.allclose(q2, q2_ref, atol=2e-2, rtol=2e-2), (
        f"max abs err {float(jnp.max(jnp.abs(q2 - q2_ref)))}")

    print("KERNEL_OK")
</pallas_src>

<mosaic_0001>
module attributes {stable_mosaic.version = 11 : i64} {
  func.func @critic_kernel(%arg0: i32, %arg1: memref<8x32xf32, #tpu.memory_space<vmem>>, %arg2: memref<8x8xf32, #tpu.memory_space<vmem>>, %arg3: memref<32x256xbf16, #tpu.memory_space<vmem>>, %arg4: memref<1x256xf32, #tpu.memory_space<vmem>>, %arg5: memref<8x128xbf16, #tpu.memory_space<vmem>>, %arg6: memref<1x128xf32, #tpu.memory_space<vmem>>, %arg7: memref<256x128xbf16, #tpu.memory_space<vmem>>, %arg8: memref<1x128xf32, #tpu.memory_space<vmem>>, %arg9: memref<256x128xbf16, #tpu.memory_space<vmem>>, %arg10: memref<1x128xf32, #tpu.memory_space<vmem>>, %arg11: memref<1x128xf32, #tpu.memory_space<vmem>>, %arg12: memref<1x1xf32, #tpu.memory_space<vmem>>, %arg13: memref<1x8xf32, #tpu.memory_space<vmem>>) attributes {dimension_semantics = [#tpu.dimension_semantics<parallel>], iteration_bounds = array<i64: 1>, scalar_prefetch = 0 : i64, scratch_operands = 0 : i64, tpu.core_type = #tpu.core_type<tc>, window_params = [{transform_indices = @transform_0, window_bounds = array<i64: 8, 32>}, {transform_indices = @transform_1, window_bounds = array<i64: 8, 8>}, {pipeline_mode = #tpu.pipeline_mode<synchronous>, transform_indices = @transform_2, window_bounds = array<i64: 32, 256>}, {pipeline_mode = #tpu.pipeline_mode<synchronous>, transform_indices = @transform_3, window_bounds = array<i64: 1, 256>}, {pipeline_mode = #tpu.pipeline_mode<synchronous>, transform_indices = @transform_4, window_bounds = array<i64: 8, 128>}, {pipeline_mode = #tpu.pipeline_mode<synchronous>, transform_indices = @transform_5, window_bounds = array<i64: 1, 128>}, {pipeline_mode = #tpu.pipeline_mode<synchronous>, transform_indices = @transform_6, window_bounds = array<i64: 256, 128>}, {pipeline_mode = #tpu.pipeline_mode<synchronous>, transform_indices = @transform_7, window_bounds = array<i64: 1, 128>}, {pipeline_mode = #tpu.pipeline_mode<synchronous>, transform_indices = @transform_8, window_bounds = array<i64: 256, 128>}, {pipeline_mode = #tpu.pipeline_mode<synchronous>, transform_indices = @transform_9, window_bounds = array<i64: 1, 128>}, {pipeline_mode = #tpu.pipeline_mode<synchronous>, transform_indices = @transform_10, window_bounds = array<i64: 1, 128>}, {pipeline_mode = #tpu.pipeline_mode<synchronous>, transform_indices = @transform_11, window_bounds = array<i64: 1, 1>}, {transform_indices = @transform_12, window_bounds = array<i64: 1, 8>}]} {
    %c0 = arith.constant 0 : index
    %c0_0 = arith.constant 0 : index
    %0 = vector.load %arg1[%c0, %c0_0] : memref<8x32xf32, #tpu.memory_space<vmem>>, vector<8x32xf32>
    %1 = arith.truncf %0 : vector<8x32xf32> to vector<8x32xbf16>
    %c0_1 = arith.constant 0 : index
    %c0_2 = arith.constant 0 : index
    %2 = vector.load %arg2[%c0_1, %c0_2] : memref<8x8xf32, #tpu.memory_space<vmem>>, vector<8x8xf32>
    %3 = arith.truncf %2 : vector<8x8xf32> to vector<8x8xbf16>
    %c0_3 = arith.constant 0 : index
    %c0_4 = arith.constant 0 : index
    %4 = vector.load %arg3[%c0_3, %c0_4] : memref<32x256xbf16, #tpu.memory_space<vmem>>, vector<32x256xbf16>
    %cst = arith.constant dense<0.000000e+00> : vector<8x256xf32>
    %5 = tpu.matmul %1, %4, %cst {dimension_numbers = #tpu.dot_dimension_numbers<[1], [0], [0], [1], [0, 0, 1, 1], [], []>} : vector<8x32xbf16>, vector<32x256xbf16>, vector<8x256xf32> -> vector<8x256xf32>
    %c0_5 = arith.constant 0 : index
    %c0_6 = arith.constant 0 : index
    %6 = vector.load %arg4[%c0_5, %c0_6] : memref<1x256xf32, #tpu.memory_space<vmem>>, vector<1x256xf32>
    %7 = vector.broadcast %6 : vector<1x256xf32> to vector<8x256xf32>
    %8 = arith.addf %5, %7 : vector<8x256xf32>
    %cst_7 = arith.constant 0.000000e+00 : f32
    %9 = vector.broadcast %cst_7 : f32 to vector<8x256xf32>
    %10 = arith.maximumf %8, %9 : vector<8x256xf32>
    %c0_8 = arith.constant 0 : index
    %c0_9 = arith.constant 0 : index
    %11 = vector.load %arg5[%c0_8, %c0_9] : memref<8x128xbf16, #tpu.memory_space<vmem>>, vector<8x128xbf16>
    %cst_10 = arith.constant dense<0.000000e+00> : vector<8x128xf32>
    %12 = tpu.matmul %3, %11, %cst_10 {dimension_numbers = #tpu.dot_dimension_numbers<[1], [0], [0], [1], [0, 0, 1, 1], [], []>} : vector<8x8xbf16>, vector<8x128xbf16>, vector<8x128xf32> -> vector<8x128xf32>
    %c0_11 = arith.constant 0 : index
    %c0_12 = arith.constant 0 : index
    %13 = vector.load %arg6[%c0_11, %c0_12] : memref<1x128xf32, #tpu.memory_space<vmem>>, vector<1x128xf32>
    %14 = vector.broadcast %13 : vector<1x128xf32> to vector<8x128xf32>
    %15 = arith.addf %12, %14 : vector<8x128xf32>
    %cst_13 = arith.constant 0.000000e+00 : f32
    %16 = vector.broadcast %cst_13 : f32 to vector<8x128xf32>
    %17 = arith.maximumf %15, %16 : vector<8x128xf32>
    %18 = arith.truncf %10 : vector<8x256xf32> to vector<8x256xbf16>
    %c0_14 = arith.constant 0 : index
    %c0_15 = arith.constant 0 : index
    %19 = vector.load %arg7[%c0_14, %c0_15] : memref<256x128xbf16, #tpu.memory_space<vmem>>, vector<256x128xbf16>
    %cst_16 = arith.constant dense<0.000000e+00> : vector<8x128xf32>
    %20 = tpu.matmul %18, %19, %cst_16 {dimension_numbers = #tpu.dot_dimension_numbers<[1], [0], [0], [1], [0, 0, 1, 1], [], []>} : vector<8x256xbf16>, vector<256x128xbf16>, vector<8x128xf32> -> vector<8x128xf32>
    %c0_17 = arith.constant 0 : index
    %c0_18 = arith.constant 0 : index
    %21 = vector.load %arg8[%c0_17, %c0_18] : memref<1x128xf32, #tpu.memory_space<vmem>>, vector<1x128xf32>
    %22 = vector.broadcast %21 : vector<1x128xf32> to vector<8x128xf32>
    %23 = arith.addf %20, %22 : vector<8x128xf32>
    %cst_19 = arith.constant 0.000000e+00 : f32
    %24 = vector.broadcast %cst_19 : f32 to vector<8x128xf32>
    %25 = arith.maximumf %23, %24 : vector<8x128xf32>
    %26 = arith.truncf %25 : vector<8x128xf32> to vector<8x128xbf16>
    %27 = arith.truncf %17 : vector<8x128xf32> to vector<8x128xbf16>
    %28 = tpu.concatenate %26, %27 in 1 : vector<8x128xbf16>, vector<8x128xbf16> -> vector<8x256xbf16>
    %c0_20 = arith.constant 0 : index
    %c0_21 = arith.constant 0 : index
    %29 = vector.load %arg9[%c0_20, %c0_21] : memref<256x128xbf16, #tpu.memory_space<vmem>>, vector<256x128xbf16>
    %cst_22 = arith.constant dense<0.000000e+00> : vector<8x128xf32>
    %30 = tpu.matmul %28, %29, %cst_22 {dimension_numbers = #tpu.dot_dimension_numbers<[1], [0], [0], [1], [0, 0, 1, 1], [], []>} : vector<8x256xbf16>, vector<256x128xbf16>, vector<8x128xf32> -> vector<8x128xf32>
    %c0_23 = arith.constant 0 : index
    %c0_24 = arith.constant 0 : index
    %31 = vector.load %arg10[%c0_23, %c0_24] : memref<1x128xf32, #tpu.memory_space<vmem>>, vector<1x128xf32>
    %32 = vector.broadcast %31 : vector<1x128xf32> to vector<8x128xf32>
    %33 = arith.addf %30, %32 : vector<8x128xf32>
    %cst_25 = arith.constant 0.000000e+00 : f32
    %34 = vector.broadcast %cst_25 : f32 to vector<8x128xf32>
    %35 = arith.maximumf %33, %34 : vector<8x128xf32>
    %c0_26 = arith.constant 0 : index
    %c0_27 = arith.constant 0 : index
    %36 = vector.load %arg11[%c0_26, %c0_27] : memref<1x128xf32, #tpu.memory_space<vmem>>, vector<1x128xf32>
    %37 = vector.broadcast %36 : vector<1x128xf32> to vector<8x128xf32>
    %38 = arith.mulf %35, %37 : vector<8x128xf32>
    %cst_28 = arith.constant dense<0.000000e+00> : vector<8xf32>
    %39 = vector.multi_reduction <add>, %38, %cst_28 [1] : vector<8x128xf32> to vector<8xf32>
    %40 = vector.shape_cast %39 : vector<8xf32> to vector<1x8xf32>
    %c0_29 = arith.constant 0 : index
    %c0_30 = arith.constant 0 : index
    %41 = vector.load %arg12[%c0_29, %c0_30] : memref<1x1xf32, #tpu.memory_space<vmem>>, vector<1x1xf32>
    %42 = vector.broadcast %41 : vector<1x1xf32> to vector<1x8xf32>
    %43 = arith.addf %40, %42 : vector<1x8xf32>
    %c0_31 = arith.constant 0 : index
    %c0_32 = arith.constant 0 : index
    %44 = vector.load %arg13[%c0_31, %c0_32] : memref<1x8xf32, #tpu.memory_space<vmem>>, vector<1x8xf32>
    tpu.vector_store %arg13[%c0_31, %c0_32], %43 {strides = array<i32>} : memref<1x8xf32, #tpu.memory_space<vmem>>, vector<1x8xf32>,
    return
  }
  func.func @transform_0(%arg0: i32) -> (i32, i32) {
    %c0_i32 = arith.constant 0 : i32
    %c0_i32_0 = arith.constant 0 : i32
    return %arg0, %c0_i32 : i32, i32
  }
  func.func @transform_1(%arg0: i32) -> (i32, i32) {
    %c0_i32 = arith.constant 0 : i32
    %c0_i32_0 = arith.constant 0 : i32
    return %arg0, %c0_i32 : i32, i32
  }
  func.func @transform_2(%arg0: i32) -> (i32, i32) {
    %c0_i32 = arith.constant 0 : i32
    %c0_i32_0 = arith.constant 0 : i32
    %c0_i32_1 = arith.constant 0 : i32
    return %c0_i32, %c0_i32_0 : i32, i32
  }
  func.func @transform_3(%arg0: i32) -> (i32, i32) {
    %c0_i32 = arith.constant 0 : i32
    %c0_i32_0 = arith.constant 0 : i32
    %c0_i32_1 = arith.constant 0 : i32
    return %c0_i32, %c0_i32_0 : i32, i32
  }
  func.func @transform_4(%arg0: i32) -> (i32, i32) {
    %c0_i32 = arith.constant 0 : i32
    %c0_i32_0 = arith.constant 0 : i32
    %c0_i32_1 = arith.constant 0 : i32
    return %c0_i32, %c0_i32_0 : i32, i32
  }
  func.func @transform_5(%arg0: i32) -> (i32, i32) {
    %c0_i32 = arith.constant 0 : i32
    %c0_i32_0 = arith.constant 0 : i32
    %c0_i32_1 = arith.constant 0 : i32
    return %c0_i32, %c0_i32_0 : i32, i32
  }
  func.func @transform_6(%arg0: i32) -> (i32, i32) {
    %c0_i32 = arith.constant 0 : i32
    %c0_i32_0 = arith.constant 0 : i32
    %c0_i32_1 = arith.constant 0 : i32
    return %c0_i32, %c0_i32_0 : i32, i32
  }
  func.func @transform_7(%arg0: i32) -> (i32, i32) {
    %c0_i32 = arith.constant 0 : i32
    %c0_i32_0 = arith.constant 0 : i32
    %c0_i32_1 = arith.constant 0 : i32
    return %c0_i32, %c0_i32_0 : i32, i32
  }
  func.func @transform_8(%arg0: i32) -> (i32, i32) {
    %c0_i32 = arith.constant 0 : i32
    %c0_i32_0 = arith.constant 0 : i32
    %c0_i32_1 = arith.constant 0 : i32
    return %c0_i32, %c0_i32_0 : i32, i32
  }
  func.func @transform_9(%arg0: i32) -> (i32, i32) {
    %c0_i32 = arith.constant 0 : i32
    %c0_i32_0 = arith.constant 0 : i32
    %c0_i32_1 = arith.constant 0 : i32
    return %c0_i32, %c0_i32_0 : i32, i32
  }
  func.func @transform_10(%arg0: i32) -> (i32, i32) {
    %c0_i32 = arith.constant 0 : i32
    %c0_i32_0 = arith.constant 0 : i32
    %c0_i32_1 = arith.constant 0 : i32
    return %c0_i32, %c0_i32_0 : i32, i32
  }
  func.func @transform_11(%arg0: i32) -> (i32, i32) {
    %c0_i32 = arith.constant 0 : i32
    %c0_i32_0 = arith.constant 0 : i32
    %c0_i32_1 = arith.constant 0 : i32
    return %c0_i32, %c0_i32_0 : i32, i32
  }
  func.func @transform_12(%arg0: i32) -> (i32, i32) {
    %c0_i32 = arith.constant 0 : i32
    %c0_i32_0 = arith.constant 0 : i32
    return %c0_i32, %arg0 : i32, i32
  }
}

</mosaic_0001>

<bundles_post_ra>
// kernel: tpu_custom_call.1
= control target key start
LH: loop header
LB: loop body
LE: loop exit
PB: predicated region body
PF: predicated region fallthrough
CT: control target
= control target key end

     0   :  { %s1063_s0 = inlined_call_operand.hbm [shape: f32[8,32], index: 0, kind: input, shape index: {}]   ;;  %s1064_s1 = inlined_call_operand.hbm [shape: f32[8,8], index: 1, kind: input, shape index: {}]   ;;  %s1065_s2 = inlined_call_operand.hbm [shape: bf16[32,256], index: 2, kind: input, shape index: {}]   ;;  %s1066_s3 = inlined_call_operand.vmem [shape: f32[1,256], index: 3, kind: input, shape index: {}]   ;;  %s1067_s4 = inlined_call_operand.vmem [shape: bf16[8,128], index: 4, kind: input, shape index: {}]   ;;  %s1068_s5 = inlined_call_operand.vmem [shape: f32[1,128], index: 5, kind: input, shape index: {}]   ;;  %s1069_s6 = inlined_call_operand.hbm [shape: bf16[256,128], index: 6, kind: input, shape index: {}]   ;;  %s1070_s7 = inlined_call_operand.vmem [shape: f32[1,128], index: 7, kind: input, shape index: {}]   ;;  %s1071_s8 = inlined_call_operand.hbm [shape: bf16[256,128], index: 8, kind: input, shape index: {}]   ;;  %s1072_s9 = inlined_call_operand.vmem [shape: f32[1,128], index: 9, kind: input, shape index: {}]   ;;  %s1073_s10 = inlined_call_operand.vmem [shape: f32[1,128], index: 10, kind: input, shape index: {}]   ;;  %s1074_s11 = inlined_call_operand.<no memory space> [shape: f32[1,1], index: 11, kind: input, shape index: {}]   ;;  %s1075_s12 = inlined_call_operand.hbm [shape: f32[1,8], index: 12, kind: output, shape index: {}]  }
   0x1   :  { %v17_v0 = vstv %s1074_s11 }
   0x2   :  { %18 = vst [vmem:[#allocation2] sm:$0x1] %v17_v0 }
   0x3   :  { %19 = vsyncpa [#allocation4], 0 }
   0x4   :  { %20 = vsyncpa [#allocation7], 0 }
   0x5   :  { %21 = vsyncpa [#allocation10], 0 }
   0x6   :  { %22 = vsyncpa [#allocation5], 0  ;;  %s931_s23 = smov [#allocation6]   ;;  %s932_s25 = smov [#allocation9]  }
   0x7   :  { %s39_s24 = sshll.u32 %s931_s23, 4  ;;  %s66_s26 = sshll.u32 %s932_s25, 4  ;;  %s40_s24 = int_to_ptr.vmem [resolvable:$true] %s39_s24  ;;  %s67_s26 = int_to_ptr.vmem [resolvable:$true] %s66_s26 }
   0x8   :  { %s811_s27 = scalar_lea.vmem %s40_s24, 128  ;;  %p816_p1 = scmp.lt.s32.totalorder %s40_s24, %s40_s24 }
   0x9   :  { %p812_p0 = scmp.ne.s32.totalorder %s40_s24, %s811_s27  ;;  %p817_p2 = scmp.lt.s32.totalorder %s811_s27, %s811_s27 }
   0xb   :  { %p818_p3 = por %p817_p2, %p816_p1 }
   0xd   :  { %p819_p4 = pnand %p818_p3, %p812_p0 }
   0xf   :  { %822 = shalt.err (!%p819_p4)
}
  0x10   :  { %42 = dma.hbm_to_vmem [thread:$0]  %s1064_s1, 128, %s40_s24, [#allocation7]  }
  0x11   :  { %s831_s29 = scalar_lea.vmem %s67_s26, 2048  ;;  %p836_p6 = scmp.lt.s32.totalorder %s67_s26, %s67_s26 }
  0x12   :  { %p832_p5 = scmp.ne.s32.totalorder %s67_s26, %s831_s29  ;;  %p837_p7 = scmp.lt.s32.totalorder %s831_s29, %s831_s29 }
  0x14   :  { %p838_p8 = por %p837_p7, %p836_p6 }
  0x16   :  { %p839_p9 = pnand %p838_p8, %p832_p5 }
  0x18   :  { %842 = shalt.err (!%p839_p9)
}
  0x19   :  { %s933_s30 = smov 64   ;;  %s934_s13 = smov 4  }
  0x1a   :  { %72 = dma.hbm_to_vmem [thread:$0]  %s1069_s6, 2048, %s67_s26, [#allocation10], %s933_s30, %s933_s30, %s934_s13  }
  0x1b   :  { %s935_s16 = smov [#allocation3]   ;;  %s936_s18 = smov [#allocation8]  }
  0x1c   :  { %s29_s17 = sshll.u32 %s935_s16, 4  ;;  %s48_s1 = sshll.u32 %s936_s18, 4  ;;  %s30_s17 = int_to_ptr.vmem [resolvable:$true] %s29_s17  ;;  %s49_s1 = int_to_ptr.vmem [resolvable:$true] %s48_s1 }
  0x1d   :  { %s851_s19 = scalar_lea.vmem %s30_s17, 128  ;;  %p856_p11 = scmp.lt.s32.totalorder %s30_s17, %s30_s17 }
  0x1e   :  { %p852_p10 = scmp.ne.s32.totalorder %s30_s17, %s851_s19  ;;  %p857_p12 = scmp.lt.s32.totalorder %s851_s19, %s851_s19 }
  0x20   :  { %p858_p13 = por %p857_p12, %p856_p11 }
  0x22   :  { %p859_p0 = pnand %p858_p13, %p852_p10 }
  0x24   :  { %862 = shalt.err (!%p859_p0)
}
  0x25   :  { %32 = dma.hbm_to_vmem [thread:$0]  %s1063_s0, 128, %s30_s17, [#allocation4]  }
  0x26   :  { %s871_s22 = scalar_lea.vmem %s49_s1, 512  ;;  %p876_p2 = scmp.lt.s32.totalorder %s49_s1, %s49_s1 }
  0x27   :  { %p872_p1 = scmp.ne.s32.totalorder %s49_s1, %s871_s22  ;;  %p877_p3 = scmp.lt.s32.totalorder %s871_s22, %s871_s22 }
  0x29   :  { %p878_p4 = por %p877_p3, %p876_p2 }
  0x2b   :  { %p879_p5 = pnand %p878_p4, %p872_p1 }
  0x2d   :  { %882 = shalt.err (!%p879_p5)
}
  0x2e   :  { %s937_s6 = smov 128   ;;  %s938_s23 = smov 8  }
  0x2f   :  { %54 = dma.hbm_to_vmem [thread:$0]  %s1065_s2, 512, %s49_s1, [#allocation7], %s937_s6, %s937_s6, %s938_s23  }
  0x30   :  { %s939_s26 = smov [#allocation11]  }
  0x31   :  { %s80_s27 = sshll.u32 %s939_s26, 4  ;;  %s81_s27 = int_to_ptr.vmem [resolvable:$true] %s80_s27 }
  0x32   :  { %s891_s28 = scalar_lea.vmem %s81_s27, 2048  ;;  %p896_p7 = scmp.lt.s32.totalorder %s81_s27, %s81_s27 }
  0x33   :  { %p892_p6 = scmp.ne.s32.totalorder %s81_s27, %s891_s28  ;;  %p897_p8 = scmp.lt.s32.totalorder %s891_s28, %s891_s28 }
  0x35   :  { %p898_p9 = por %p897_p8, %p896_p7 }
  0x37   :  { %p899_p10 = pnand %p898_p9, %p892_p6 }
  0x39   :  { %902 = shalt.err (!%p899_p10)
}
  0x3a   :  { %86 = dma.hbm_to_vmem [thread:$0]  %s1071_s8, 2048, %s81_s27, [#allocation10], %s933_s30, %s933_s30, %s934_s13  }
  0x3b   :  { %923 = dma.done.wait [#allocation4], 128  }
  0x3c   :  { %924 = vsyncadd [#allocation4], 4294967168 }
  0x3d   :  { %925 = dma.done.wait [#allocation7], 640  }
  0x3e   :  { %926 = vsyncadd [#allocation7], 4294966656 }
  0x3f   :  { %927 = dma.done.wait [#allocation10], 4096  }
  0x40   :  { %928 = vsyncadd [#allocation10], 4294963200  ;;  %v940_v1 = vmov 0   ;;  %v941_v2 = vmov 0.0   ;;  %vm942_vm0 = vmmov 0   ;;  %vm208_vm1 = vcmask 1043456  }
  0x41   :  { %185 = vmatprep.mubr.bf16.mxu0 %v940_v1  ;;  %745 = vmatprep.subr.bf16.mxu1 %v941_v2  ;;  %v765_v3 = vld [vmem:[#allocation8 + $0x14] ss:$8 sps:$4 sm:$0xff]   ;;  %v767_v4 = vld [vmem:[#allocation8 + $0x10] ss:$8 sps:$4 sm:$0xff]   ;;  %v768_v5 = vld [vmem:[#allocation8 + $0x4] ss:$8 sps:$4 sm:$0xff]   ;;  %v119_v40 = vlaneseq }
  0x42   :  { %747 = vmatprep.mubr.msk.bf16.mxu1 %vm942_vm0, %v941_v2  ;;  %764 = vset.pattern.permute.xlu0 %v940_v1  ;;  %v770_v6 = vld [vmem:[#allocation8] ss:$8 sps:$4 sm:$0xff]   ;;  %v109_v7 = vld [vmem:[#allocation3] sm:$0xff]  ;;  %v111_v9 = vld [vmem:[#allocation6] sm:$0xff]  ;;  %vm204_vm2 = vcmask 64512   ;;  %vm149_vm3 = vcmask 261120  }
  0x43   :  { %165 = vmatprep.subr.bf16.mxu0 %v765_v3  ;;  %v196_v8 = vld [vmem:[%s1067_s4] sm:$0xf]  ;;  %v112_v11 = vpack.c.bf16 %v111_v9, %v111_v9  ;;  %v771_v12 = vld [vmem:[#allocation9 + $0x78] sm:$0xff]   ;;  %v110_v14 = vpack.c.bf16 %v109_v7, %v109_v7  ;;  %v777_v19 = vld [vmem:[#allocation9 + $0x60] sm:$0xff]   ;;  %v1036_v41 = vshrl.u32 %v119_v40, 7  ;;  %vm638_vm4 = vcmask 57344  }
  0x44   :  { %166 = vmatpush1.bf16.msra.mxu0 %v767_v4  ;;  %v210_v10 = vsel %vm208_vm1, %v196_v8, 0  ;;  %v772_v13 = vld [vmem:[#allocation9 + $0x38] sm:$0xff]   ;;  %v773_v15 = vld [vmem:[#allocation9 + $0x70] sm:$0xff]   ;;  %v775_v17 = vld [vmem:[#allocation9 + $0x68] sm:$0xff]  }
  0x45   :  { %167 = vmatprep.subr.bf16.mxu0 %v768_v5  ;;  %746 = vmatpush3.bf16.msra.mxu1 %v210_v10  ;;  %v774_v16 = vld [vmem:[#allocation9 + $0x30] sm:$0xff]   ;;  %v776_v18 = vld [vmem:[#allocation9 + $0x28] sm:$0xff]   ;;  %v778_v20 = vld [vmem:[#allocation9 + $0x20] sm:$0xff]   ;;  %v121_v42 = vsub.s32 0, %v1036_v41  ;;  %v125_v44 = vsub.s32 1, %v1036_v41 }
  0x46   :  { %701 = vmatprep.subr.bf16.mxu1 %v771_v12  ;;  %v779_v21 = vld [vmem:[#allocation9 + $0x58] sm:$0xff]   ;;  %v781_v23 = vld [vmem:[#allocation9 + $0x50] sm:$0xff]   ;;  %v783_v25 = vld [vmem:[#allocation9 + $0x48] sm:$0xff]  }
  0x47   :  { %v780_v22 = vld [vmem:[#allocation9 + $0x18] sm:$0xff]   ;;  %v782_v24 = vld [vmem:[#allocation9 + $0x10] sm:$0xff]   ;;  %v784_v26 = vld [vmem:[#allocation9 + $0x8] sm:$0xff]  }
  0x48   :  { %168 = vmatpush1.bf16.msra.mxu0 %v770_v6  ;;  %748 = vmatmul.mubr.msk.bf16.vlgmr.msra.gmra.mxu1 %vm204_vm2, %v112_v11  ;;  %v785_v27 = vld [vmem:[#allocation9 + $0x40] sm:$0xff]   ;;  %v787_v29 = vld [vmem:[#allocation11 + $0x78] sm:$0xff]   ;;  %v789_v31 = vld [vmem:[#allocation11 + $0x70] sm:$0xff]  }
  0x49   :  { %702 = vmatpush3.bf16.msra.mxu1 %v772_v13  ;;  %v786_v28 = vld [vmem:[#allocation9] sm:$0xff]   ;;  %v788_v30 = vld [vmem:[#allocation11 + $0x38] sm:$0xff]   ;;  %723 = vmatprep.subr.bf16.mxu0 %v787_v29  ;;  %v790_v32 = vld [vmem:[#allocation11 + $0x30] sm:$0xff]  }
  0x4a   :  { %703 = vmatprep.subr.bf16.mxu1 %v773_v15  ;;  %v791_v33 = vld [vmem:[#allocation11 + $0x68] sm:$0xff]   ;;  %v793_v35 = vld [vmem:[#allocation11 + $0x60] sm:$0xff]   ;;  %v795_v37 = vld [vmem:[#allocation11 + $0x58] sm:$0xff]  }
  0x4b   :  { %661 = vmatmul.mubr.msk.bf16.vlgmr.msra.gmra.mxu0 %vm149_vm3, %v110_v14  ;;  %v792_v34 = vld [vmem:[#allocation11 + $0x28] sm:$0xff]   ;;  %v794_v36 = vld [vmem:[#allocation11 + $0x20] sm:$0xff]   ;;  %v796_v38 = vld [vmem:[#allocation11 + $0x18] sm:$0xff]  }
  0x4c   :  { %724 = vmatpush3.bf16.msra.mxu0 %v788_v30  ;;  %v797_v39 = vld [vmem:[#allocation11 + $0x50] sm:$0xff]   ;;  %v662_v45 = vld [vmem:[%s1068_s5] ss:$0 sm:$0xff]  ;;  %v801_v4 = vld [vmem:[#allocation11 + $0x40] sm:$0xff]  }
  0x4d   :  { %704 = vmatpush3.bf16.msra.mxu1 %v774_v16  ;;  %725 = vmatprep.subr.bf16.mxu0 %v789_v31  ;;  %v117_v43 = vld [vmem:[%s1066_s3] sm:$0x3]  ;;  %v802_v5 = vld [vmem:[#allocation11] sm:$0xff]  }
  0x4e   :  { %705 = vmatprep.subr.bf16.mxu1 %v775_v17  ;;  %v122_v46 = vrot.slane %v117_v43, %v121_v42  ;;  %v126_v48 = vrot.slane %v117_v43, %v125_v44  ;;  %v798_v1 = vld [vmem:[#allocation11 + $0x10] sm:$0xff]   ;;  %v799_v2 = vld [vmem:[#allocation11 + $0x48] sm:$0xff]  }
  0x4f   :  { %v800_v3 = vld [vmem:[#allocation11 + $0x8] sm:$0xff]  }
  0x50   :  { %726 = vmatpush3.bf16.msra.mxu0 %v790_v32  ;;  %v664_v7 = vld [vmem:[%s1070_s7] ss:$0 sm:$0xff] }
  0x51   :  { %706 = vmatpush3.bf16.msra.mxu1 %v776_v18  ;;  %727 = vmatprep.subr.bf16.mxu0 %v791_v33  ;;  %v681_v17 = vld [vmem:[%s1072_s9] ss:$0 sm:$0xff]  ;;  %s943_s9 = smov [#allocation12]  }
  0x52   :  { %707 = vmatprep.subr.bf16.mxu1 %v777_v19  ;;  %s646_s17 = sshll.u32 %s943_s9, 4  ;;  %s647_s17 = int_to_ptr.vmem [resolvable:$true] %s646_s17 }
  0x53   :  { %s907_s18 = scalar_lea.vmem %s647_s17, 32  ;;  %p908_p12 = scmp.lt.s32.totalorder %s647_s17, %s647_s17 }
  0x54   :  { %728 = vmatpush3.bf16.msra.mxu0 %v792_v34 }
  0x55   :  { %708 = vmatpush3.bf16.msra.mxu1 %v778_v20  ;;  %729 = vmatprep.subr.bf16.mxu0 %v793_v35 }
  0x56   :  { %709 = vmatprep.subr.bf16.mxu1 %v779_v21 }
  0x58   :  { %730 = vmatpush3.bf16.msra.mxu0 %v794_v36 }
  0x59   :  { %710 = vmatpush3.bf16.msra.mxu1 %v780_v22  ;;  %731 = vmatprep.subr.bf16.mxu0 %v795_v37  ;;  %v698_v22 = vld [vmem:[%s1073_s10] ss:$0 sm:$0xff]  ;;  %s903_s10 = scalar_lea.vmem %s647_s17, 16 }
  0x5a   :  { %711 = vmatprep.subr.bf16.mxu1 %v781_v23  ;;  %p904_p11 = scmp.ne.s32.totalorder %s647_s17, %s903_s10  ;;  %p909_p13 = scmp.lt.s32.totalorder %s907_s18, %s903_s10 }
  0x5c   :  { %732 = vmatpush3.bf16.msra.mxu0 %v796_v38  ;;  %p910_p0 = por %p909_p13, %p908_p12 }
  0x5d   :  { %712 = vmatpush3.bf16.msra.mxu1 %v782_v24  ;;  %733 = vmatprep.subr.bf16.mxu0 %v797_v39 }
  0x5e   :  { %713 = vmatprep.subr.bf16.mxu1 %v783_v25  ;;  %v619_v25 = vld [vmem:[#allocation2] sm:$0x1]  ;;  %p911_p1 = pnand %p910_p0, %p904_p11 }
  0x60   :  { %734 = vmatpush3.bf16.msra.mxu0 %v798_v1 }
  0x61   :  { %714 = vmatpush3.bf16.msra.mxu1 %v784_v26  ;;  %735 = vmatprep.subr.bf16.mxu0 %v799_v2 }
  0x62   :  { %715 = vmatprep.subr.bf16.mxu1 %v785_v27  ;;  %v632_v27 = vand.u32 127, %v119_v40 }
  0x64   :  { %736 = vmatpush3.bf16.msra.mxu0 %v800_v3  ;;  %v635_v29 = vsub.s32 %v632_v27, %v1036_v41 }
  0x65   :  { %716 = vmatpush3.bf16.msra.mxu1 %v786_v28  ;;  %737 = vmatprep.subr.bf16.mxu0 %v801_v4 }
  0x68   :  { %738 = vmatpush3.bf16.msra.mxu0 %v802_v5 }
 0x108   :  { %v246_v47 = vpop.f32.mrf.mxu1 }
 0x109   :  { %v247_v49 = vadd.f32 %v662_v45, %v246_v47 }
 0x10a   :  { %v749_v51 = vpop.f32.mrf.mxu1 }
 0x10b   :  { %v187_v50 = vpop.f32.mrf.mxu0  ;;  %v252_v53 = vmax.f32 %v247_v49, 0.0 }
 0x10c   :  { %v188_v52 = vadd.f32 %v187_v50, %v122_v46  ;;  %v249_v55 = vpop.f32.mrf.mxu1 }
 0x10d   :  { %v189_v54 = vpop.f32.mrf.mxu0  ;;  %v432_v57 = vpack.c.bf16 %v252_v53, %v252_v53 }
 0x10e   :  { %v190_v56 = vadd.f32 %v189_v54, %v126_v48  ;;  %v194_v58 = vmax.f32 %v188_v52, 0.0  ;;  %v750_v60 = vpop.f32.mrf.mxu1 }
 0x10f   :  { %v191_v59 = vpop.f32.mrf.mxu0  ;;  %600 = vmatprep.mubr.bf16.mxu0 %v432_v57 }
 0x110   :  { %v195_v61 = vmax.f32 %v190_v56, 0.0  ;;  %v253_v0 = vpack.c.bf16 %v194_v58, %v194_v58 }
 0x111   :  { %v192_v62 = vpop.f32.mrf.mxu0 }
 0x112   :  { %v254_v63 = vpack.c.bf16 %v195_v61, %v195_v61 }
 0x114   :  { %422 = vmatprep.mubr.bf16.mxu1 %v254_v63 }
 0x115   :  { %423 = vmatmul.mubr.bf16.vlgmr.msra.gmra.mxu1 %v253_v0 }
 0x1d5   :  { %v717_v6 = vpop.f32.mrf.mxu1 }
 0x1d7   :  { %v718_v8 = vpop.f32.mrf.mxu1 }
 0x1d8   :  { %v719_v9 = vadd.f32 %v718_v8, %v717_v6 }
 0x1d9   :  { %v720_v10 = vpop.f32.mrf.mxu1 }
 0x1da   :  { %v425_v11 = vadd.f32 %v719_v9, %v664_v7 }
 0x1db   :  { %v721_v12 = vpop.f32.mrf.mxu1 }
 0x1dc   :  { %v430_v13 = vmax.f32 %v425_v11, 0.0 }
 0x1de   :  { %v431_v14 = vpack.c.bf16 %v430_v13, %v430_v13 }
 0x1e0   :  { %601 = vmatmul.mubr.bf16.vlgmr.msra.gmra.mxu0 %v431_v14 }
 0x2a0   :  { %v739_v15 = vpop.f32.mrf.mxu0 }
 0x2a2   :  { %v740_v16 = vpop.f32.mrf.mxu0 }
 0x2a3   :  { %v741_v18 = vadd.f32 %v740_v16, %v739_v15 }
 0x2a4   :  { %v742_v19 = vpop.f32.mrf.mxu0 }
 0x2a5   :  { %v603_v20 = vadd.f32 %v741_v18, %v681_v17 }
 0x2a6   :  { %v743_v21 = vpop.f32.mrf.mxu0 }
 0x2a7   :  { %v608_v23 = vmax.f32 %v603_v20, 0.0 }
 0x2a9   :  { %v616_v24 = vmul.f32 %v698_v22, %v608_v23 }
 0x2ab   :  { %617 = vadd.xlane.f32.xlu0 %v616_v24 }
 0x2c1   :  { %622 = vperm.xlu0 %764, %v619_v25  }
 0x334   :  { %v618_v26 = vpop.xlane.xlu0 %617 }
 0x33c   :  { %v623_v28 = vpop.permute.xlu0 %622 }
 0x33d   :  { %v628_v30 = vrot.slane %v623_v28, %v121_v42 }
 0x33f   :  { %v629_v31 = vadd.f32 %v628_v30, %v618_v26 }
 0x341   :  { %v636_v32 = vrot.slane %v629_v31, %v635_v29 }
 0x343   :  { %639 = vst.msk [vmem:[#allocation12] sm:$0x1] %vm638_vm4, %v636_v32 }
 0x344   :  { %914 = shalt.err (!%p911_p1)
}
 0x345   :  { %649 = dma.vmem_to_hbm [thread:$0]  %s647_s17, 16, %s1075_s12, [#allocation5]  }
 0x346   :  { %929 = dma.done.wait [#allocation5], 16  }
 0x347   :  { %930 = vsyncadd [#allocation5], 4294967280 }
 0x348   :  { %653 = vsyncpa [#allocation4], 1 }
 0x349   :  { %654 = vsyncpa [#allocation7], 1 }
 0x34a   :  { %655 = vsyncpa [#allocation10], 1 }
 0x34b   :  { %656 = vsyncpa [#allocation5], 1 }

</bundles_post_ra>
